<compile_context>
chip_gen: v7x
topology: tpu7x:2x2x1
jax: 0.10.0
libtpu: 0.0.40
codegen_flags: <defaults>
</compile_context>

<pallas_src>
import functools

import jax
import jax.numpy as jnp
from jax.experimental import pallas as pl
from jax.experimental.pallas import tpu as pltpu


def _choose_pack(rows: int, w: int):
    """Pick (rows-per-lane-row P, rows handled by the packed kernel)."""
    if w % 128 == 0:
        return 1, rows                      # already lane-dense without packing
    # Largest power-of-two divisor of `rows`, capped at 128.
    p_div = 1
    while p_div < 128 and rows % (p_div * 2) == 0:
        p_div *= 2
    if p_div * w >= 128:
        return p_div, rows                  # lane-dense blocks, no remainder
    # Rows have only a tiny power-of-two factor: run the bulk through a
    # P = 128 packing and hand the (< P) leftover rows to plain XLA, instead
    # of dropping everything to lane-sparse blocks (review item 7).
    p = 128
    while p > rows:
        p //= 2
    return p, (rows // p) * p


def _choose_tile_rows(s: int, row_bytes: int) -> int:
    """Packed rows per grid step (second-to-last block dim)."""
    if s <= 8:
        return s
    cap = max(8, ((8 << 20) // row_bytes) // 8 * 8)      # <= 8 MiB input block
    floor = max(8, ((1 << 20) // row_bytes) // 8 * 8)    # >= ~1 MiB input block
    floor = min(floor, cap)
    target = -(-s // 8)                                   # aim for >= 8 steps
    target = max(8, ((target + 7) // 8) * 8)
    tile = min(cap, max(floor, target))
    if tile >= s:
        return s                                          # == full dim: legal
    return tile                                           # multiple of 8: legal


def _segment_filter(w: int, p: int, dtype) -> jnp.ndarray:
    """(p*w, p) exact 0/1 filter: column j selects packed row j's w elements."""
    i = jnp.arange(p * w, dtype=jnp.int32) // w
    j = jnp.arange(p, dtype=jnp.int32)
    return (i[:, None] == j[None, :]).astype(dtype)


def _collapse_kernel(x_ref, f_ref, o_ref, *, scale, split_f32):
    f = f_ref[...]
    if split_f32:
        # Manual bf16 hi/lo split: 2 DEFAULT-precision MXU passes, ~f32 exact
        # because the filter entries (0/1) are exact in bf16 and the MXU
        # accumulates in f32.  Cheaper than HIGH (3 passes) / HIGHEST (6).
        x = x_ref[...]
        x_hi = x.astype(jnp.bfloat16)
        x_lo = (x - x_hi.astype(jnp.float32)).astype(jnp.bfloat16)
        acc = jnp.dot(x_hi, f, preferred_element_type=jnp.float32)
        acc = acc + jnp.dot(x_lo, f, preferred_element_type=jnp.float32)
    else:
        acc = jnp.dot(x_ref[...], f, preferred_element_type=jnp.float32)
    # W**-0.5 applied once on the (tile, P) result (W x fewer elements).
    o_ref[...] = (acc * scale).astype(o_ref.dtype)


def _collapse_packed(x_main: jnp.ndarray, w: int, p: int) -> jnp.ndarray:
    """Collapse (rows, w) -> (rows,) with rows % p == 0 via the Pallas kernel."""
    rows = x_main.shape[0]
    s = rows // p
    lane_w = p * w
    x2 = x_main.reshape(s, lane_w)            # contiguous -> free reshape
    dtype = x_main.dtype
    split_f32 = dtype == jnp.float32
    f_dtype = jnp.bfloat16 if (split_f32 or dtype == jnp.bfloat16) else dtype
    filt = _segment_filter(w, p, f_dtype)

    tile_s = _choose_tile_rows(s, lane_w * x_main.dtype.itemsize)
    grid = (pl.cdiv(s, tile_s),)

    out = pl.pallas_call(
        functools.partial(_collapse_kernel, scale=w ** -0.5, split_f32=split_f32),
        out_shape=jax.ShapeDtypeStruct((s, p), dtype),
        grid=grid,
        in_specs=[
            pl.BlockSpec((tile_s, lane_w), lambda i: (i, 0)),
            pl.BlockSpec((lane_w, p), lambda i: (0, 0)),   # resident constant
        ],
        out_specs=pl.BlockSpec((tile_s, p), lambda i: (i, 0)),
        compiler_params=pltpu.CompilerParams(
            dimension_semantics=("parallel",),
            vmem_limit_bytes=40 * 1024 * 1024,
        ),
    )(x2, filt)
    return out.reshape(rows)


def wavelet_attention_new(x: jnp.ndarray) -> jnp.ndarray:
    """x: (B, C, H, W) with W a power of two.  Returns (B, C*H)."""
    b, c, h, w = x.shape
    assert w >= 1 and (w & (w - 1)) == 0, "last dim must be a power of two"
    rows = b * c * h

    if w == 1:
        return x.reshape(b, c * h)

    x_flat = x.reshape(rows, w)
    p, main_rows = _choose_pack(rows, w)

    pieces = []
    if main_rows > 0:
        x_main = x_flat if main_rows == rows else x_flat[:main_rows]
        pieces.append(_collapse_packed(x_main, w, p))
    if main_rows < rows:
        # Tiny leftover (< p rows): plain XLA row-sum, keeps the bulk on the
        # lane-dense Pallas path.
        rem = x_flat[main_rows:].astype(jnp.float32)
        pieces.append((rem.sum(axis=-1) * (w ** -0.5)).astype(x.dtype))

    out = pieces[0] if len(pieces) == 1 else jnp.concatenate(pieces, axis=0)
    return out.reshape(b, c * h)


def _reference(x: jnp.ndarray) -> jnp.ndarray:
    ref = x.astype(jnp.float32)
    while ref.shape[-1] > 1:
        ref = (ref[..., 0::2] + ref[..., 1::2]) * (2.0 ** -0.5)
    return ref.reshape(x.shape[0], -1)


if __name__ == "__main__":
    key = jax.random.PRNGKey(0)
    k0, k1, k2, k3 = jax.random.split(key, 4)

    def check(x, atol, rtol):
        out = jax.block_until_ready(wavelet_attention_new(x))
        ref = _reference(x)
        assert out.shape == ref.shape, (out.shape, ref.shape)
        out_f32 = out.astype(jnp.float32)
        err = jnp.max(jnp.abs(out_f32 - ref))
        assert jnp.allclose(out_f32, ref, atol=atol, rtol=rtol), \
            f"max abs err = {err}"

    # 1) Main path: f32, rows divisible by 128 -> P = 128 fully lane-dense.
    x1 = jax.random.normal(k0, (2, 4, 16, 16), dtype=jnp.float32)
    check(x1, 1e-3, 1e-3)

    # 2) f32, rows = 24 -> divisor packing P = 8 (lane-dense input, no remainder).
    x2 = jax.random.normal(k1, (2, 3, 4, 32), dtype=jnp.float32)
    check(x2, 1e-3, 1e-3)

    # 3) f32, odd row count -> packed bulk + XLA remainder rows.
    x3 = jax.random.normal(k2, (1, 5, 5, 8), dtype=jnp.float32)
    check(x3, 1e-3, 1e-3)

    # 4) bf16 input: single-pass native bf16 matmul path.
    x4 = jax.random.normal(k3, (2, 4, 16, 16), dtype=jnp.bfloat16)
    check(x4, 3e-2, 3e-2)

    # 5) W >= 128: un-packed (P = 1) path.
    x5 = jax.random.normal(k0, (1, 2, 4, 256), dtype=jnp.float32)
    check(x5, 1e-3, 1e-3)

    print("KERNEL_OK")
</pallas_src>

<mosaic_0001>
module attributes {stable_mosaic.version = 11 : i64} {
  func.func @_collapse_kernel(%arg0: i32, %arg1: memref<1x2048xf32, #tpu.memory_space<vmem>>, %arg2: memref<2048x128xbf16, #tpu.memory_space<vmem>>, %arg3: memref<1x128xf32, #tpu.memory_space<vmem>>) attributes {dimension_semantics = [#tpu.dimension_semantics<parallel>], iteration_bounds = array<i64: 1>, scalar_prefetch = 0 : i64, scratch_operands = 0 : i64, tpu.core_type = #tpu.core_type<tc>, window_params = [{transform_indices = @transform_0, window_bounds = array<i64: 1, 2048>}, {pipeline_mode = #tpu.pipeline_mode<synchronous>, transform_indices = @transform_1, window_bounds = array<i64: 2048, 128>}, {transform_indices = @transform_2, window_bounds = array<i64: 1, 128>}]} {
    %c0 = arith.constant 0 : index
    %c0_0 = arith.constant 0 : index
    %0 = vector.load %arg2[%c0, %c0_0] : memref<2048x128xbf16, #tpu.memory_space<vmem>>, vector<2048x128xbf16>
    %c0_1 = arith.constant 0 : index
    %c0_2 = arith.constant 0 : index
    %1 = vector.load %arg1[%c0_1, %c0_2] : memref<1x2048xf32, #tpu.memory_space<vmem>>, vector<1x2048xf32>
    %2 = arith.truncf %1 : vector<1x2048xf32> to vector<1x2048xbf16>
    %3 = arith.extf %2 : vector<1x2048xbf16> to vector<1x2048xf32>
    %4 = arith.subf %1, %3 : vector<1x2048xf32>
    %5 = arith.truncf %4 : vector<1x2048xf32> to vector<1x2048xbf16>
    %cst = arith.constant dense<0.000000e+00> : vector<1x128xf32>
    %6 = tpu.matmul %2, %0, %cst {dimension_numbers = #tpu.dot_dimension_numbers<[1], [0], [0], [1], [0, 0, 1, 1], [], []>} : vector<1x2048xbf16>, vector<2048x128xbf16>, vector<1x128xf32> -> vector<1x128xf32>
    %cst_3 = arith.constant dense<0.000000e+00> : vector<1x128xf32>
    %7 = tpu.matmul %5, %0, %cst_3 {dimension_numbers = #tpu.dot_dimension_numbers<[1], [0], [0], [1], [0, 0, 1, 1], [], []>} : vector<1x2048xbf16>, vector<2048x128xbf16>, vector<1x128xf32> -> vector<1x128xf32>
    %8 = arith.addf %6, %7 : vector<1x128xf32>
    %cst_4 = arith.constant 2.500000e-01 : f32
    %9 = vector.broadcast %cst_4 : f32 to vector<1x128xf32>
    %10 = arith.mulf %8, %9 : vector<1x128xf32>
    %c0_5 = arith.constant 0 : index
    %c0_6 = arith.constant 0 : index
    %11 = vector.load %arg3[%c0_5, %c0_6] : memref<1x128xf32, #tpu.memory_space<vmem>>, vector<1x128xf32>
    tpu.vector_store %arg3[%c0_5, %c0_6], %10 {strides = array<i32>} : memref<1x128xf32, #tpu.memory_space<vmem>>, vector<1x128xf32>,
    return
  }
  func.func @transform_0(%arg0: i32) -> (i32, i32) {
    %c0_i32 = arith.constant 0 : i32
    %c0_i32_0 = arith.constant 0 : i32
    return %arg0, %c0_i32 : i32, i32
  }
  func.func @transform_1(%arg0: i32) -> (i32, i32) {
    %c0_i32 = arith.constant 0 : i32
    %c0_i32_0 = arith.constant 0 : i32
    %c0_i32_1 = arith.constant 0 : i32
    return %c0_i32, %c0_i32_0 : i32, i32
  }
  func.func @transform_2(%arg0: i32) -> (i32, i32) {
    %c0_i32 = arith.constant 0 : i32
    %c0_i32_0 = arith.constant 0 : i32
    return %arg0, %c0_i32 : i32, i32
  }
}

</mosaic_0001>

<bundles_post_ra>
// kernel: tpu_custom_call.1
= control target key start
LH: loop header
LB: loop body
LE: loop exit
PB: predicated region body
PF: predicated region fallthrough
CT: control target
= control target key end

     0   :  { %7 = vsyncpa [#allocation3], 0  ;;  %s3381_s0 = inlined_call_operand.hbm [shape: f32[1,2048], index: 0, kind: input, shape index: {}]   ;;  %s3382_s1 = inlined_call_operand.hbm [shape: bf16[2048,128], index: 1, kind: input, shape index: {}]   ;;  %s3383_s2 = inlined_call_operand.hbm [shape: f32[1,128], index: 2, kind: output, shape index: {}]  }
   0x1   :  { %8 = vsyncpa [#allocation6], 0 }
   0x2   :  { %9 = vsyncpa [#allocation4], 0  ;;  %s2773_s9 = smov [#allocation2]   ;;  %s2774_s11 = smov [#allocation5]  }
   0x3   :  { %s16_s10 = sshll.u32 %s2773_s9, 4  ;;  %s25_s12 = sshll.u32 %s2774_s11, 4  ;;  %s17_s10 = int_to_ptr.vmem [resolvable:$true] %s16_s10  ;;  %s2794_s12 = int_to_ptr.vmem [resolvable:$true] %s25_s12 }
   0x4   :  { %s2701_s15 = scalar_lea.hbm %s3381_s0, 256 }
   0x5   :  { %p2702_p0 = scmp.ne.s32.totalorder %s3381_s0, %s2701_s15  ;;  %p2705_p1 = scmp.lt.u32.totalorder %s2701_s15, %s3381_s0 }
   0x7   :  { %p2707_p2 = pnand %p2705_p1, %p2702_p0 }
   0x9   :  { %2710 = shalt.err (!%p2707_p2)
}
   0xa   :  { %s2711_s20 = scalar_lea.vmem %s17_s10, 256  ;;  %p2716_p4 = scmp.lt.s32.totalorder %s17_s10, %s17_s10 }
   0xb   :  { %p2712_p3 = scmp.ne.s32.totalorder %s17_s10, %s2711_s20  ;;  %p2717_p5 = scmp.lt.s32.totalorder %s2711_s20, %s2711_s20 }
   0xd   :  { %p2718_p6 = por %p2717_p5, %p2716_p4 }
   0xf   :  { %p2719_p7 = pnand %p2718_p6, %p2712_p3 }
  0x11   :  { %2722 = shalt.err (!%p2719_p7)
}
  0x12   :  { %19 = dma.hbm_to_vmem [thread:$0]  %s3381_s0, 256, %s17_s10, [#allocation3]  }
  0x13   :  { %s2723_s25 = scalar_lea.hbm %s3382_s1, 16384 }
  0x14   :  { %p2724_p8 = scmp.ne.s32.totalorder %s3382_s1, %s2723_s25  ;;  %p2727_p9 = scmp.lt.u32.totalorder %s2723_s25, %s3382_s1 }
  0x16   :  { %p2729_p10 = pnand %p2727_p9, %p2724_p8 }
  0x18   :  { %2732 = shalt.err (!%p2729_p10)
}
  0x19   :  { %s2733_s30 = scalar_lea.vmem %s2794_s12, 16384  ;;  %p2738_p12 = scmp.lt.s32.totalorder %s2794_s12, %s2794_s12 }
  0x1a   :  { %p2734_p11 = scmp.ne.s32.totalorder %s2794_s12, %s2733_s30  ;;  %p2739_p13 = scmp.lt.s32.totalorder %s2733_s30, %s2733_s30 }
  0x1c   :  { %p2740_p0 = por %p2739_p13, %p2738_p12 }
  0x1e   :  { %p2741_p1 = pnand %p2740_p0, %p2734_p11 }
  0x20   :  { %2744 = shalt.err (!%p2741_p1)
}
  0x21   :  { %s2775_s0 = smov 64   ;;  %s2776_s3 = smov 4  }
  0x22   :  { %31 = dma.hbm_to_vmem [thread:$0]  %s3382_s1, 16384, %s2794_s12, [#allocation6], %s2775_s0, %s2775_s0, %s2776_s3  }
  0x23   :  { %2767 = dma.done.wait [#allocation3], 256  }
  0x24   :  { %2768 = vsyncadd [#allocation3], 4294967040 }
  0x25   :  { %2769 = dma.done.wait [#allocation6], 16384  }
  0x26   :  { %2770 = vsyncadd [#allocation6], 4294950912  ;;  %v2539_v0 = vld [vmem:[#allocation5 + $0x40] sm:$0xff]   ;;  %v2543_v4 = vld [vmem:[#allocation5 + $0x48] sm:$0xff]   ;;  %v299_v16 = vlaneseq  ;;  %v2777_v53 = vmov 1966171168  }
  0x27   :  { %v2540_v1 = vld [vmem:[#allocation5 + $0xc0] sm:$0xff]   ;;  %2181 = vmatprep.subr.bf16.mxu0 %v2539_v0  ;;  %v2544_v5 = vld [vmem:[#allocation5 + $0xc8] sm:$0xff]   ;;  %v2547_v8 = vld [vmem:[#allocation5 + $0x50] sm:$0xff]   ;;  %v432_v54 = vunpack.c.l.s4 %v2777_v53  ;;  %s2778_s1 = smov [#allocation7]  }
  0x28   :  { %v2541_v2 = vld [vmem:[#allocation5] sm:$0xff]   ;;  %2203 = vmatprep.subr.bf16.mxu1 %v2540_v1  ;;  %v2545_v6 = vld [vmem:[#allocation5 + $0x8] sm:$0xff]   ;;  %v2548_v9 = vld [vmem:[#allocation5 + $0xd0] sm:$0xff]   ;;  %v2825_v21 = vshrl.u32 %v299_v16, 7  ;;  %s2043_s6 = sshll.u32 %s2778_s1, 4  ;;  %s2044_s6 = int_to_ptr.vmem [resolvable:$true] %s2043_s6 }
  0x29   :  { %v2542_v3 = vld [vmem:[#allocation5 + $0x80] sm:$0xff]   ;;  %2182 = vmatpush3.bf16.msra.mxu0 %v2541_v2  ;;  %v2546_v7 = vld [vmem:[#allocation5 + $0x88] sm:$0xff]   ;;  %v2549_v10 = vld [vmem:[#allocation5 + $0x10] sm:$0xff]   ;;  %v433_v63 = vunpack.c.0.s8 %v432_v54  ;;  %s2745_s7 = scalar_lea.vmem %s2044_s6, 16  ;;  %s2749_s8 = scalar_lea.vmem %s2044_s6, 32 }
  0x2a   :  { %2204 = vmatpush3.bf16.msra.mxu1 %v2542_v3  ;;  %2183 = vmatprep.subr.bf16.mxu0 %v2543_v4  ;;  %v2550_v11 = vld [vmem:[#allocation5 + $0x90] sm:$0xff]   ;;  %v2551_v12 = vld [vmem:[#allocation5 + $0x58] sm:$0xff]   ;;  %v2555_v17 = vld [vmem:[#allocation5 + $0x60] sm:$0xff]   ;;  %v2828_v26 = vsub.s32 0, %v2825_v21  ;;  %v2831_v28 = vsub.s32 1, %v2825_v21  ;;  %v2834_v30 = vsub.s32 2, %v2825_v21  ;;  %p2746_p2 = scmp.ne.s32.totalorder %s2044_s6, %s2745_s7  ;;  %p2750_p3 = scmp.lt.s32.totalorder %s2044_s6, %s2044_s6 }
  0x2b   :  { %2205 = vmatprep.subr.bf16.mxu1 %v2544_v5  ;;  %v2552_v13 = vld [vmem:[#allocation5 + $0xd8] sm:$0xff]   ;;  %v2556_v18 = vld [vmem:[#allocation5 + $0xe0] sm:$0xff]   ;;  %v2559_v22 = vld [vmem:[#allocation5 + $0x68] sm:$0xff]   ;;  %v2837_v32 = vsub.s32 3, %v2825_v21  ;;  %v2840_v34 = vsub.s32 4, %v2825_v21  ;;  %v2843_v36 = vsub.s32 5, %v2825_v21  ;;  %p2751_p4 = scmp.lt.s32.totalorder %s2749_s8, %s2745_s7 }
  0x2c   :  { %v2553_v14 = vld [vmem:[#allocation5 + $0x18] sm:$0xff]   ;;  %v2557_v19 = vld [vmem:[#allocation5 + $0x20] sm:$0xff]   ;;  %v2560_v23 = vld [vmem:[#allocation5 + $0xe8] sm:$0xff]   ;;  %v2846_v38 = vsub.s32 6, %v2825_v21  ;;  %v2849_v40 = vsub.s32 7, %v2825_v21 }
  0x2d   :  { %2184 = vmatpush3.bf16.msra.mxu0 %v2545_v6  ;;  %v2554_v15 = vld [vmem:[#allocation5 + $0x98] sm:$0xff]   ;;  %v2558_v20 = vld [vmem:[#allocation5 + $0xa0] sm:$0xff]   ;;  %v2561_v24 = vld [vmem:[#allocation5 + $0x28] sm:$0xff]   ;;  %p2752_p5 = por %p2751_p4, %p2750_p3 }
  0x2e   :  { %2206 = vmatpush3.bf16.msra.mxu1 %v2546_v7  ;;  %2185 = vmatprep.subr.bf16.mxu0 %v2547_v8  ;;  %v2562_v25 = vld [vmem:[#allocation5 + $0xa8] sm:$0xff]   ;;  %v2563_v27 = vld [vmem:[#allocation5 + $0x70] sm:$0xff]   ;;  %v2567_v35 = vld [vmem:[#allocation5 + $0x78] sm:$0xff]   ;;  %v2884_v8 = vsub.s32 %v433_v63, %v2825_v21 }
  0x2f   :  { %2207 = vmatprep.subr.bf16.mxu1 %v2548_v9  ;;  %v2564_v29 = vld [vmem:[#allocation5 + $0xf0] sm:$0xff]   ;;  %v2568_v37 = vld [vmem:[#allocation5 + $0xf8] sm:$0xff]   ;;  %v2571_v47 = vld [vmem:[#allocation5 + $0x140] sm:$0xff]   ;;  %p2753_p6 = pnand %p2752_p5, %p2746_p2 }
  0x30   :  { %v2565_v31 = vld [vmem:[#allocation5 + $0x30] sm:$0xff]   ;;  %v2569_v39 = vld [vmem:[#allocation5 + $0x38] sm:$0xff]   ;;  %v2572_v52 = vld [vmem:[#allocation5 + $0x1c0] sm:$0xff]  }
  0x31   :  { %2186 = vmatpush3.bf16.msra.mxu0 %v2549_v10  ;;  %v2566_v33 = vld [vmem:[#allocation5 + $0xb0] sm:$0xff]   ;;  %v2570_v41 = vld [vmem:[#allocation5 + $0xb8] sm:$0xff]   ;;  %v2940_v63 = vld [vmem:[#allocation5 + $0x180] sm:$0xff]  }
  0x32   :  { %2208 = vmatpush3.bf16.msra.mxu1 %v2550_v11  ;;  %2187 = vmatprep.subr.bf16.mxu0 %v2551_v12  ;;  %v295_v42 = vld [vmem:[#allocation2] sm:$0xff] }
  0x33   :  { %2209 = vmatprep.subr.bf16.mxu1 %v2552_v13  ;;  %v302_v43 = vrot.slane %v295_v42, %v2828_v26  ;;  %v306_v44 = vrot.slane %v295_v42, %v2831_v28  ;;  %v310_v45 = vrot.slane %v295_v42, %v2834_v30  ;;  %v314_v46 = vrot.slane %v295_v42, %v2837_v32  ;;  %v2886_v13 = vld [vmem:[#allocation2 + $0x8] sm:$0xff] }
  0x34   :  { %v318_v48 = vrot.slane %v295_v42, %v2840_v34  ;;  %v322_v49 = vrot.slane %v295_v42, %v2843_v36  ;;  %v326_v50 = vrot.slane %v295_v42, %v2846_v38  ;;  %v330_v51 = vrot.slane %v295_v42, %v2849_v40 }
  0x35   :  { %2188 = vmatpush3.bf16.msra.mxu0 %v2553_v14  ;;  %v2859_v55 = vpack.c.bf16 %v302_v43, %v302_v43  ;;  %v2861_v56 = vpack.c.bf16 %v306_v44, %v306_v44  ;;  %v2863_v57 = vpack.c.bf16 %v310_v45, %v310_v45  ;;  %v2865_v58 = vpack.c.bf16 %v314_v46, %v314_v46 }
  0x36   :  { %2210 = vmatpush3.bf16.msra.mxu1 %v2554_v15  ;;  %2189 = vmatprep.subr.bf16.mxu0 %v2555_v17  ;;  %v2867_v59 = vpack.c.bf16 %v318_v48, %v318_v48  ;;  %v2869_v60 = vpack.c.bf16 %v322_v49, %v322_v49  ;;  %v2871_v61 = vpack.c.bf16 %v326_v50, %v326_v50 }
  0x37   :  { %2211 = vmatprep.subr.bf16.mxu1 %v2556_v18  ;;  %v2873_v62 = vpack.c.bf16 %v330_v51, %v330_v51  ;;  %v395_v0 = vunpack.c.l.bf16 %v2859_v55  ;;  %v396_v1 = vunpack.c.l.bf16 %v2861_v56  ;;  %v397_v2 = vunpack.c.l.bf16 %v2863_v57 }
  0x38   :  { %v398_v3 = vunpack.c.l.bf16 %v2865_v58  ;;  %v399_v4 = vunpack.c.l.bf16 %v2867_v59  ;;  %v400_v5 = vunpack.c.l.bf16 %v2869_v60  ;;  %v401_v6 = vunpack.c.l.bf16 %v2871_v61 }
  0x39   :  { %2190 = vmatpush3.bf16.msra.mxu0 %v2557_v19  ;;  %v402_v7 = vunpack.c.l.bf16 %v2873_v62  ;;  %v427_v9 = vcombine.low %v395_v0, %v396_v1  ;;  %v338_v21 = vrot.slane %v2886_v13, %v2831_v28 }
  0x3a   :  { %2212 = vmatpush3.bf16.msra.mxu1 %v2558_v20  ;;  %2191 = vmatprep.subr.bf16.mxu0 %v2559_v22  ;;  %v428_v10 = vcombine.low %v397_v2, %v398_v3  ;;  %v429_v11 = vcombine.low %v399_v4, %v400_v5  ;;  %v334_v20 = vrot.slane %v2886_v13, %v2828_v26 }
  0x3b   :  { %2213 = vmatprep.subr.bf16.mxu1 %v2560_v23  ;;  %v430_v12 = vcombine.low %v401_v6, %v402_v7  ;;  %v437_v14 = vrot.slane %v427_v9, %v2884_v8  ;;  %v342_v22 = vrot.slane %v2886_v13, %v2834_v30  ;;  %v346_v23 = vrot.slane %v2886_v13, %v2837_v32  ;;  %v2946_v6 = vld [vmem:[#allocation5 + $0x148] sm:$0xff]  }
  0x3c   :  { %v444_v15 = vrot.slane %v428_v10, %v2884_v8  ;;  %v451_v16 = vrot.slane %v429_v11, %v2884_v8 }
  0x3d   :  { %2192 = vmatpush3.bf16.msra.mxu0 %v2561_v24  ;;  %v458_v17 = vrot.slane %v430_v12, %v2884_v8  ;;  %v2916_v43 = vpack.c.bf16 %v346_v23, %v346_v23  ;;  %v2952_v12 = vld [vmem:[#allocation5 + $0x1c8] sm:$0xff]  }
  0x3e   :  { %2214 = vmatpush3.bf16.msra.mxu1 %v2562_v25  ;;  %2193 = vmatprep.subr.bf16.mxu0 %v2563_v27  ;;  %v459_v18 = vcombine.low %v437_v14, %v444_v15  ;;  %v350_v27 = vrot.slane %v2886_v13, %v2840_v34 }
  0x3f   :  { %2215 = vmatprep.subr.bf16.mxu1 %v2564_v29  ;;  %v460_v19 = vcombine.low %v451_v16, %v458_v17  ;;  %v354_v29 = vrot.slane %v2886_v13, %v2843_v36  ;;  %3443 = vst [vmem:[#allocation14_spill] sm:$0xff] %v2916_v43  ;;  %v406_v9 = vunpack.c.l.bf16 %v2916_v43  ;;  %v2956_v16 = vld [vmem:[#allocation5 + $0x108] sm:$0xff]   ;;  %v3095_v43 = vld [vmem:[#allocation5 + $0x298] sm:$0xff]  }
  0x40   :  { %v467_v24 = vrot.slane %v459_v18, %v2884_v8  ;;  %v2920_v45 = vpack.c.bf16 %v350_v27, %v350_v27  ;;  %v2968_v27 = vld [vmem:[#allocation5 + $0x110] sm:$0xff]   ;;  %3457 = vst [vmem:[#allocation28_spill] sm:$0xff] %v3095_v43 }
  0x41   :  { %2194 = vmatpush3.bf16.msra.mxu0 %v2565_v31  ;;  %v474_v25 = vrot.slane %v460_v19, %v2884_v8  ;;  %v358_v31 = vrot.slane %v2886_v13, %v2846_v38  ;;  %v2922_v46 = vpack.c.bf16 %v354_v29, %v354_v29  ;;  %v2958_v19 = vld [vmem:[#allocation5 + $0x188] sm:$0xff]   ;;  %v2970_v29 = vld [vmem:[#allocation5 + $0x190] sm:$0xff]  }
  0x42   :  { %2216 = vmatpush3.bf16.msra.mxu1 %v2566_v33  ;;  %2195 = vmatprep.subr.bf16.mxu0 %v2567_v35  ;;  %v362_v33 = vrot.slane %v2886_v13, %v2849_v40  ;;  %3444 = vst [vmem:[#allocation15_spill] sm:$0xff] %v2920_v45  ;;  %v407_v10 = vunpack.c.l.bf16 %v2920_v45  ;;  %v3063_v45 = vld [vmem:[#allocation5 + $0x248] sm:$0xff]  }
  0x43   :  { %2217 = vmatprep.subr.bf16.mxu1 %v2568_v37  ;;  %v475_v35 = vcombine.low %v467_v24, %v474_v25  ;;  %v2910_v37 = vpack.c.bf16 %v334_v20, %v334_v20  ;;  %3445 = vst [vmem:[#allocation16_spill] sm:$0xff] %v2922_v46  ;;  %v408_v11 = vunpack.c.l.bf16 %v2922_v46  ;;  %v2962_v20 = vld [vmem:[#allocation5 + $0x150] sm:$0xff]  }
  0x44   :  { %v2926_v48 = vpack.c.bf16 %v362_v33, %v362_v33  ;;  %v2978_v33 = vld [vmem:[#allocation5 + $0x1d8] sm:$0xff]  }
  0x45   :  { %2196 = vmatpush3.bf16.msra.mxu0 %v2569_v39  ;;  %3440 = vst [vmem:[#allocation11_spill] sm:$0xff] %v2910_v37  ;;  %v2912_v39 = vpack.c.bf16 %v338_v21, %v338_v21  ;;  %v2918_v44 = vsub.f32 %v295_v42, %v475_v35  ;;  %v403_v53 = vunpack.c.l.bf16 %v2910_v37  ;;  %v478_v24 = vcombine.low %v407_v10, %v408_v11  ;;  %v3010_v11 = vld [vmem:[#allocation5 + $0x128] sm:$0xff]   ;;  %v3081_v37 = vld [vmem:[#allocation5 + $0x210] sm:$0xff]  }
  0x46   :  { %2218 = vmatpush3.bf16.msra.mxu1 %v2570_v41  ;;  %2225 = vmatprep.subr.bf16.mxu0 %v2571_v47  ;;  %v2914_v41 = vpack.c.bf16 %v342_v22, %v342_v22  ;;  %v2924_v47 = vpack.c.bf16 %v358_v31, %v358_v31  ;;  %3447 = vst [vmem:[#allocation18_spill] sm:$0xff] %v2926_v48  ;;  %v410_v15 = vunpack.c.l.bf16 %v2926_v48  ;;  %v2966_v22 = vld [vmem:[#allocation5 + $0x1d0] sm:$0xff]   ;;  %v2974_v31 = vld [vmem:[#allocation5 + $0x158] sm:$0xff]   ;;  %v3067_v48 = vld [vmem:[#allocation5 + $0x2c8] sm:$0xff]  }
  0x47   :  { %2247 = vmatprep.subr.bf16.mxu1 %v2572_v52  ;;  %3441 = vst [vmem:[#allocation12_spill] sm:$0xff] %v2912_v39  ;;  %v538_v49 = vrot.slane %v2918_v44, %v2831_v28  ;;  %v546_v50 = vrot.slane %v2918_v44, %v2837_v32  ;;  %v534_v51 = vrot.slane %v2918_v44, %v2828_v26  ;;  %v2936_v52 = vld [vmem:[#allocation5 + $0x100] sm:$0xff]   ;;  %v404_v54 = vunpack.c.l.bf16 %v2912_v39 }
  0x48   :  { %3442 = vst [vmem:[#allocation13_spill] sm:$0xff] %v2914_v41  ;;  %3446 = vst [vmem:[#allocation17_spill] sm:$0xff] %v2924_v47  ;;  %v542_v42 = vrot.slane %v2918_v44, %v2834_v30  ;;  %v554_v0 = vrot.slane %v2918_v44, %v2843_v36  ;;  %v562_v1 = vrot.slane %v2918_v44, %v2849_v40  ;;  %v405_v7 = vunpack.c.l.bf16 %v2914_v41  ;;  %v3079_v41 = vld [vmem:[#allocation5 + $0x2d0] sm:$0xff]   ;;  %v3163_v39 = vld [vmem:[#allocation5 + $0x380] sm:$0xff]  }
  0x49   :  { %v612_v2 = vpack.c.bf16 %v538_v49, %v538_v49  ;;  %v614_v3 = vpack.c.bf16 %v546_v50, %v546_v50  ;;  %v611_v4 = vpack.c.bf16 %v534_v51, %v534_v51  ;;  %v409_v14 = vunpack.c.l.bf16 %v2924_v47  ;;  %v3059_v47 = vld [vmem:[#allocation5 + $0x280] sm:$0xff]   ;;  %3451 = vst [vmem:[#allocation22_spill] sm:$0xff] %v3079_v41  ;;  %3452 = vst [vmem:[#allocation23_spill] sm:$0xff] %v3081_v37 }
  0x4a   :  { %v613_v5 = vpack.c.bf16 %v542_v42, %v542_v42  ;;  %v616_v17 = vpack.c.bf16 %v554_v0, %v554_v0  ;;  %v618_v18 = vpack.c.bf16 %v562_v1, %v562_v1  ;;  %v476_v21 = vcombine.low %v403_v53, %v404_v54  ;;  %v2984_v42 = vld [vmem:[#allocation5 + $0x118] sm:$0xff]   ;;  %v2990_v54 = vld [vmem:[#allocation5 + $0x160] sm:$0xff]  }
  0x4b   :  { %1427 = vmatprep.mubr.bf16.mxu0 %v612_v2  ;;  %1467 = vmatprep.mubr.bf16.mxu1 %v614_v3  ;;  %v477_v23 = vcombine.low %v405_v7, %v406_v9  ;;  %v479_v25 = vcombine.low %v409_v14, %v410_v15  ;;  %v500_v50 = vrot.slane %v478_v24, %v2884_v8  ;;  %v2986_v53 = vld [vmem:[#allocation5 + $0x198] sm:$0xff]   ;;  %v2994_v0 = vld [vmem:[#allocation5 + $0x1e0] sm:$0xff]   ;;  %v3006_v7 = vld [vmem:[#allocation5 + $0x1e8] sm:$0xff]  }
  0x4c   :  { %1428 = vmatmul.mubr.bf16.vlgmr.msra.gmra.mrb[0].mxu0 %v611_v4  ;;  %1468 = vmatmul.mubr.bf16.vlgmr.msra.gmra.mrb[0].mxu1 %v613_v5  ;;  %v486_v35 = vrot.slane %v476_v21, %v2884_v8  ;;  %v2996_v3 = vld [vmem:[#allocation5 + $0x120] sm:$0xff]   ;;  %v3002_v5 = vld [vmem:[#allocation5 + $0x168] sm:$0xff]   ;;  %v3016_v15 = vld [vmem:[#allocation5 + $0x170] sm:$0xff]  }
  0x4d   :  { %2226 = vmatpush3.bf16.msra.mxu0 %v2936_v52  ;;  %2248 = vmatpush3.bf16.msra.mxu1 %v2940_v63  ;;  %v493_v49 = vrot.slane %v477_v23, %v2884_v8  ;;  %v507_v51 = vrot.slane %v479_v25, %v2884_v8  ;;  %v2998_v4 = vld [vmem:[#allocation5 + $0x1a0] sm:$0xff]   ;;  %v3012_v14 = vld [vmem:[#allocation5 + $0x1a8] sm:$0xff]   ;;  %v3022_v21 = vld [vmem:[#allocation5 + $0x130] sm:$0xff]  }
  0x4e   :  { %2227 = vmatprep.subr.bf16.mxu0 %v2946_v6  ;;  %2249 = vmatprep.subr.bf16.mxu1 %v2952_v12  ;;  %v3028_v23 = vld [vmem:[#allocation5 + $0x178] sm:$0xff]  }
  0x4f   :  { %1507 = vmatprep.mubr.bf16.mxu0 %v616_v17  ;;  %1547 = vmatprep.mubr.bf16.mxu1 %v618_v18  ;;  %v508_v1 = vcombine.low %v486_v35, %v493_v49  ;;  %v509_v2 = vcombine.low %v500_v50, %v507_v51  ;;  %v3020_v17 = vld [vmem:[#allocation5 + $0x1f0] sm:$0xff]   ;;  %v3032_v24 = vld [vmem:[#allocation5 + $0x1f8] sm:$0xff]   ;;  %v550_v50 = vrot.slane %v2918_v44, %v2840_v34 }
  0x50   :  { %v3037_v35 = vld [vmem:[#allocation5 + $0x138] sm:$0xff]   ;;  %v558_v51 = vrot.slane %v2918_v44, %v2846_v38 }
  0x51   :  { %2228 = vmatpush3.bf16.msra.mxu0 %v2956_v16  ;;  %2250 = vmatpush3.bf16.msra.mxu1 %v2958_v19  ;;  %v516_v9 = vrot.slane %v508_v1, %v2884_v8  ;;  %v523_v10 = vrot.slane %v509_v2, %v2884_v8  ;;  %v3024_v8 = vld [vmem:[#allocation5 + $0x1b0] sm:$0xff]   ;;  %v3039_v49 = vld [vmem:[#allocation5 + $0x1b8] sm:$0xff]   ;;  %v3047_v1 = vld [vmem:[#allocation5 + $0x240] sm:$0xff]  }
  0x52   :  { %2229 = vmatprep.subr.bf16.mxu0 %v2962_v20  ;;  %2251 = vmatprep.subr.bf16.mxu1 %v2966_v22  ;;  %v3053_v2 = vld [vmem:[#allocation5 + $0x200] sm:$0xff]  }
  0x53   :  { %v524_v18 = vcombine.low %v516_v9, %v523_v10  ;;  %v615_v10 = vpack.c.bf16 %v550_v50, %v550_v50  ;;  %v3071_v50 = vld [vmem:[#allocation5 + $0x288] sm:$0xff]  }
  0x54   :  { %3449 = vst [vmem:[#allocation20_spill] sm:$0xff] %v3071_v50 }
  0x55   :  { %2230 = vmatpush3.bf16.msra.mxu0 %v2968_v27  ;;  %2252 = vmatpush3.bf16.msra.mxu1 %v2970_v29  ;;  %v3035_v25 = vsub.f32 %v2886_v13, %v524_v18  ;;  %v3051_v13 = vld [vmem:[#allocation5 + $0x2c0] sm:$0xff]   ;;  %v617_v18 = vpack.c.bf16 %v558_v51, %v558_v51  ;;  %v3075_v51 = vld [vmem:[#allocation5 + $0x250] sm:$0xff]  }
  0x56   :  { %2231 = vmatprep.subr.bf16.mxu0 %v2974_v31  ;;  %2253 = vmatprep.subr.bf16.mxu1 %v2978_v33  ;;  %3450 = vst [vmem:[#allocation21_spill] sm:$0xff] %v3075_v51 }
  0x57   :  { %v570_v9 = vrot.slane %v3035_v25, %v2831_v28  ;;  %v578_v44 = vrot.slane %v3035_v25, %v2837_v32  ;;  %v3069_v28 = vld [vmem:[#allocation5 + $0x208] sm:$0xff]  }
  0x58   :  { %3448 = vst [vmem:[#allocation19_spill] sm:$0xff] %v3069_v28 }
  0x59   :  { %2232 = vmatpush3.bf16.msra.mxu0 %v2984_v42  ;;  %2254 = vmatpush3.bf16.msra.mxu1 %v2986_v53  ;;  %v620_v46 = vpack.c.bf16 %v570_v9, %v570_v9  ;;  %v622_v32 = vpack.c.bf16 %v578_v44, %v578_v44  ;;  %v3083_v9 = vld [vmem:[#allocation5 + $0x290] sm:$0xff]   ;;  %v3087_v44 = vld [vmem:[#allocation5 + $0x258] sm:$0xff]  }
  0x5a   :  { %2233 = vmatprep.subr.bf16.mxu0 %v2990_v54  ;;  %2255 = vmatprep.subr.bf16.mxu1 %v2994_v0  ;;  %3453 = vst [vmem:[#allocation24_spill] sm:$0xff] %v3083_v9  ;;  %3454 = vst [vmem:[#allocation25_spill] sm:$0xff] %v3087_v44 }
  0x5d   :  { %2234 = vmatpush3.bf16.msra.mxu0 %v2996_v3  ;;  %2256 = vmatpush3.bf16.msra.mxu1 %v2998_v4 }
  0x5e   :  { %2235 = vmatprep.subr.bf16.mxu0 %v3002_v5  ;;  %2257 = vmatprep.subr.bf16.mxu1 %v3006_v7 }
  0x61   :  { %2236 = vmatpush3.bf16.msra.mxu0 %v3010_v11  ;;  %2258 = vmatpush3.bf16.msra.mxu1 %v3012_v14 }
  0x62   :  { %2237 = vmatprep.subr.bf16.mxu0 %v3016_v15  ;;  %2259 = vmatprep.subr.bf16.mxu1 %v3020_v17 }
  0x65   :  { %2238 = vmatpush3.bf16.msra.mxu0 %v3022_v21  ;;  %2260 = vmatpush3.bf16.msra.mxu1 %v3024_v8 }
  0x66   :  { %2239 = vmatprep.subr.bf16.mxu0 %v3028_v23  ;;  %2261 = vmatprep.subr.bf16.mxu1 %v3032_v24 }
  0x69   :  { %2240 = vmatpush3.bf16.msra.mxu0 %v3037_v35  ;;  %2262 = vmatpush3.bf16.msra.mxu1 %v3039_v49 }
  0x6a   :  { %2269 = vmatprep.subr.bf16.mxu0 %v3047_v1  ;;  %2291 = vmatprep.subr.bf16.mxu1 %v3051_v13 }
  0x6c   :  { %1508 = vmatmul.mubr.bf16.vlgmr.msra.gmra.mrb[4].mxu0 %v615_v10  ;;  %1548 = vmatmul.mubr.bf16.vlgmr.msra.gmra.mrb[4].mxu1 %v617_v18  ;;  %v3091_v10 = vld [vmem:[#allocation5 + $0x2d8] sm:$0xff]  }
  0x6d   :  { %2270 = vmatpush3.bf16.msra.mxu0 %v3053_v2  ;;  %2292 = vmatpush3.bf16.msra.mxu1 %v3059_v47  ;;  %3455 = vst [vmem:[#allocation26_spill] sm:$0xff] %v3091_v10  ;;  %v3093_v18 = vld [vmem:[#allocation5 + $0x218] sm:$0xff]  }
  0x6e   :  { %2271 = vmatprep.subr.bf16.mxu0 %v3063_v45  ;;  %2293 = vmatprep.subr.bf16.mxu1 %v3067_v48  ;;  %3456 = vst [vmem:[#allocation27_spill] sm:$0xff] %v3093_v18 }
  0x6f   :  { %1587 = vmatprep.mubr.bf16.mxu0 %v620_v46  ;;  %1627 = vmatprep.mubr.bf16.mxu1 %v622_v32  ;;  %v3099_v46 = vld [vmem:[#allocation5 + $0x260] sm:$0xff]  }
  0x70   :  { %3458 = vst [vmem:[#allocation29_spill] sm:$0xff] %v3099_v46  ;;  %v3103_v32 = vld [vmem:[#allocation5 + $0x2e0] sm:$0xff]  }
  0x71   :  { %2272 = vmatpush3.bf16.msra.mxu0 %v3069_v28  ;;  %2294 = vmatpush3.bf16.msra.mxu1 %v3071_v50  ;;  %3459 = vst [vmem:[#allocation30_spill] sm:$0xff] %v3103_v32  ;;  %v3111_v50 = vld [vmem:[#allocation5 + $0x268] sm:$0xff]  }
  0x72   :  { %2273 = vmatprep.subr.bf16.mxu0 %v3075_v51  ;;  %2295 = vmatprep.subr.bf16.mxu1 %v3079_v41  ;;  %v3105_v51 = vld [vmem:[#allocation5 + $0x220] sm:$0xff]   ;;  %3462 = vst [vmem:[#allocation33_spill] sm:$0xff] %v3111_v50 }
  0x73   :  { %3460 = vst [vmem:[#allocation31_spill] sm:$0xff] %v3105_v51  ;;  %v3107_v41 = vld [vmem:[#allocation5 + $0x2a0] sm:$0xff]  }
  0x74   :  { %3461 = vst [vmem:[#allocation32_spill] sm:$0xff] %v3107_v41 }
  0x75   :  { %2274 = vmatpush3.bf16.msra.mxu0 %v3081_v37  ;;  %2296 = vmatpush3.bf16.msra.mxu1 %v3083_v9  ;;  %v3115_v9 = vld [vmem:[#allocation5 + $0x2e8] sm:$0xff]   ;;  %v3123_v37 = vld [vmem:[#allocation5 + $0x270] sm:$0xff]  }
  0x76   :  { %2275 = vmatprep.subr.bf16.mxu0 %v3087_v44  ;;  %2297 = vmatprep.subr.bf16.mxu1 %v3091_v10  ;;  %3463 = vst [vmem:[#allocation34_spill] sm:$0xff] %v3115_v9  ;;  %v3117_v44 = vld [vmem:[#allocation5 + $0x228] sm:$0xff]   ;;  %3466 = vst [vmem:[#allocation37_spill] sm:$0xff] %v3123_v37 }
  0x77   :  { %3464 = vst [vmem:[#allocation35_spill] sm:$0xff] %v3117_v44  ;;  %v3119_v10 = vld [vmem:[#allocation5 + $0x2a8] sm:$0xff]  }
  0x78   :  { %3465 = vst [vmem:[#allocation36_spill] sm:$0xff] %v3119_v10 }
  0x79   :  { %2276 = vmatpush3.bf16.msra.mxu0 %v3093_v18  ;;  %2298 = vmatpush3.bf16.msra.mxu1 %v3095_v43  ;;  %v3127_v43 = vld [vmem:[#allocation5 + $0x2f0] sm:$0xff]   ;;  %v3135_v18 = vld [vmem:[#allocation5 + $0x278] sm:$0xff]  }
  0x7a   :  { %2277 = vmatprep.subr.bf16.mxu0 %v3099_v46  ;;  %2299 = vmatprep.subr.bf16.mxu1 %v3103_v32  ;;  %3467 = vst [vmem:[#allocation38_spill] sm:$0xff] %v3127_v43  ;;  %v3129_v46 = vld [vmem:[#allocation5 + $0x230] sm:$0xff]   ;;  %3470 = vst [vmem:[#allocation41_spill] sm:$0xff] %v3135_v18 }
  0x7b   :  { %3468 = vst [vmem:[#allocation39_spill] sm:$0xff] %v3129_v46  ;;  %v3131_v32 = vld [vmem:[#allocation5 + $0x2b0] sm:$0xff]  }
  0x7c   :  { %3469 = vst [vmem:[#allocation40_spill] sm:$0xff] %v3131_v32 }
  0x7d   :  { %2278 = vmatpush3.bf16.msra.mxu0 %v3105_v51  ;;  %2300 = vmatpush3.bf16.msra.mxu1 %v3107_v41  ;;  %v3139_v41 = vld [vmem:[#allocation5 + $0x2f8] sm:$0xff]   ;;  %v566_v51 = vrot.slane %v3035_v25, %v2828_v26  ;;  %v586_v26 = vrot.slane %v3035_v25, %v2843_v36 }
  0x7e   :  { %2279 = vmatprep.subr.bf16.mxu0 %v3111_v50  ;;  %2301 = vmatprep.subr.bf16.mxu1 %v3115_v9  ;;  %3471 = vst [vmem:[#allocation42_spill] sm:$0xff] %v3139_v41  ;;  %v3141_v50 = vld [vmem:[#allocation5 + $0x238] sm:$0xff]  }
  0x7f   :  { %v3143_v9 = vld [vmem:[#allocation5 + $0x2b8] sm:$0xff]   ;;  %v619_v28 = vpack.c.bf16 %v566_v51, %v566_v51  ;;  %v624_v36 = vpack.c.bf16 %v586_v26, %v586_v26  ;;  %v3177_v51 = vld [vmem:[#allocation5 + $0x388] sm:$0xff]  }
  0x80   :  { %3474 = vst [vmem:[#allocation45_spill] sm:$0xff] %v3177_v51  ;;  %v3193_v26 = vld [vmem:[#allocation5 + $0x358] sm:$0xff]  }
  0x81   :  { %2280 = vmatpush3.bf16.msra.mxu0 %v3117_v44  ;;  %2302 = vmatpush3.bf16.msra.mxu1 %v3119_v10  ;;  %v574_v44 = vrot.slane %v3035_v25, %v2834_v30  ;;  %v3151_v10 = vld [vmem:[#allocation5 + $0x340] sm:$0xff]   ;;  %v594_v30 = vrot.slane %v3035_v25, %v2849_v40  ;;  %v3173_v40 = vld [vmem:[#allocation5 + $0x308] sm:$0xff]   ;;  %3479 = vst [vmem:[#allocation50_spill] sm:$0xff] %v3193_v26 }
  0x82   :  { %2281 = vmatprep.subr.bf16.mxu0 %v3123_v37  ;;  %2303 = vmatprep.subr.bf16.mxu1 %v3127_v43  ;;  %v3155_v43 = vld [vmem:[#allocation5 + $0x3c0] sm:$0xff]   ;;  %3473 = vst [vmem:[#allocation44_spill] sm:$0xff] %v3173_v40 }
  0x83   :  { %3472 = vst [vmem:[#allocation43_spill] sm:$0xff] %v3155_v43  ;;  %v3157_v37 = vld [vmem:[#allocation5 + $0x300] sm:$0xff]  }
  0x85   :  { %2282 = vmatpush3.bf16.msra.mxu0 %v3129_v46  ;;  %2304 = vmatpush3.bf16.msra.mxu1 %v3131_v32  ;;  %v621_v46 = vpack.c.bf16 %v574_v44, %v574_v44  ;;  %v626_v32 = vpack.c.bf16 %v594_v30, %v594_v30  ;;  %v3181_v44 = vld [vmem:[#allocation5 + $0x350] sm:$0xff]   ;;  %v3195_v30 = vld [vmem:[#allocation5 + $0x3d8] sm:$0xff]  }
  0x86   :  { %2283 = vmatprep.subr.bf16.mxu0 %v3135_v18  ;;  %2305 = vmatprep.subr.bf16.mxu1 %v3139_v41  ;;  %v3167_v18 = vld [vmem:[#allocation5 + $0x348] sm:$0xff]   ;;  %3475 = vst [vmem:[#allocation46_spill] sm:$0xff] %v3181_v44  ;;  %3480 = vst [vmem:[#allocation51_spill] sm:$0xff] %v3195_v30 }
  0x87   :  { %v3171_v41 = vld [vmem:[#allocation5 + $0x3c8] sm:$0xff]  }
  0x89   :  { %2284 = vmatpush3.bf16.msra.mxu0 %v3141_v50  ;;  %2306 = vmatpush3.bf16.msra.mxu1 %v3143_v9 }
  0x8a   :  { %2313 = vmatprep.subr.bf16.mxu0 %v3151_v10  ;;  %2335 = vmatprep.subr.bf16.mxu1 %v3155_v43  ;;  %v3183_v43 = vld [vmem:[#allocation5 + $0x3d0] sm:$0xff]  }
  0x8b   :  { %3476 = vst [vmem:[#allocation47_spill] sm:$0xff] %v3183_v43 }
  0x8c   :  { %1588 = vmatmul.mubr.bf16.vlgmr.msra.gmra.mrb[8].mxu0 %v619_v28  ;;  %1628 = vmatmul.mubr.bf16.vlgmr.msra.gmra.mrb[8].mxu1 %v621_v46  ;;  %v3187_v28 = vld [vmem:[#allocation5 + $0x310] sm:$0xff]  }
  0x8d   :  { %2314 = vmatpush3.bf16.msra.mxu0 %v3157_v37  ;;  %2336 = vmatpush3.bf16.msra.mxu1 %v3163_v39  ;;  %3477 = vst [vmem:[#allocation48_spill] sm:$0xff] %v3187_v28  ;;  %v3189_v46 = vld [vmem:[#allocation5 + $0x390] sm:$0xff]  }
  0x8e   :  { %2315 = vmatprep.subr.bf16.mxu0 %v3167_v18  ;;  %2337 = vmatprep.subr.bf16.mxu1 %v3171_v41  ;;  %3478 = vst [vmem:[#allocation49_spill] sm:$0xff] %v3189_v46 }
  0x8f   :  { %1667 = vmatprep.mubr.bf16.mxu0 %v624_v36  ;;  %1707 = vmatprep.mubr.bf16.mxu1 %v626_v32  ;;  %v3199_v32 = vld [vmem:[#allocation5 + $0x318] sm:$0xff]  }
  0x90   :  { %3481 = vst [vmem:[#allocation52_spill] sm:$0xff] %v3199_v32  ;;  %v3201_v36 = vld [vmem:[#allocation5 + $0x398] sm:$0xff]  }
  0x91   :  { %2316 = vmatpush3.bf16.msra.mxu0 %v3173_v40  ;;  %2338 = vmatpush3.bf16.msra.mxu1 %v3177_v51  ;;  %3482 = vst [vmem:[#allocation53_spill] sm:$0xff] %v3201_v36  ;;  %v3205_v51 = vld [vmem:[#allocation5 + $0x360] sm:$0xff]   ;;  %v3253_v40 = vld [vmem:[#allocation5 + $0x3b8] sm:$0xff]  }
  0x92   :  { %2317 = vmatprep.subr.bf16.mxu0 %v3181_v44  ;;  %2339 = vmatprep.subr.bf16.mxu1 %v3183_v43  ;;  %3483 = vst [vmem:[#allocation54_spill] sm:$0xff] %v3205_v51  ;;  %v3207_v44 = vld [vmem:[#allocation5 + $0x3e0] sm:$0xff]  }
  0x93   :  { %3484 = vst [vmem:[#allocation55_spill] sm:$0xff] %v3207_v44  ;;  %v3211_v43 = vld [vmem:[#allocation5 + $0x320] sm:$0xff]  }
  0x94   :  { %3485 = vst [vmem:[#allocation56_spill] sm:$0xff] %v3211_v43 }
  0x95   :  { %2318 = vmatpush3.bf16.msra.mxu0 %v3187_v28  ;;  %2340 = vmatpush3.bf16.msra.mxu1 %v3189_v46  ;;  %v3213_v28 = vld [vmem:[#allocation5 + $0x3a0] sm:$0xff]   ;;  %v3217_v46 = vld [vmem:[#allocation5 + $0x368] sm:$0xff]  }
  0x96   :  { %2319 = vmatprep.subr.bf16.mxu0 %v3193_v26  ;;  %2341 = vmatprep.subr.bf16.mxu1 %v3195_v30  ;;  %3486 = vst [vmem:[#allocation57_spill] sm:$0xff] %v3213_v28  ;;  %3487 = vst [vmem:[#allocation58_spill] sm:$0xff] %v3217_v46  ;;  %v3219_v26 = vld [vmem:[#allocation5 + $0x3e8] sm:$0xff]  }
  0x97   :  { %3488 = vst [vmem:[#allocation59_spill] sm:$0xff] %v3219_v26  ;;  %v3223_v30 = vld [vmem:[#allocation5 + $0x328] sm:$0xff]  }
  0x98   :  { %3489 = vst [vmem:[#allocation60_spill] sm:$0xff] %v3223_v30 }
  0x99   :  { %2320 = vmatpush3.bf16.msra.mxu0 %v3199_v32  ;;  %2342 = vmatpush3.bf16.msra.mxu1 %v3201_v36  ;;  %v3225_v32 = vld [vmem:[#allocation5 + $0x3a8] sm:$0xff]   ;;  %v3229_v36 = vld [vmem:[#allocation5 + $0x370] sm:$0xff]  }
  0x9a   :  { %2321 = vmatprep.subr.bf16.mxu0 %v3205_v51  ;;  %2343 = vmatprep.subr.bf16.mxu1 %v3207_v44  ;;  %3490 = vst [vmem:[#allocation61_spill] sm:$0xff] %v3225_v32  ;;  %3491 = vst [vmem:[#allocation62_spill] sm:$0xff] %v3229_v36  ;;  %v3231_v51 = vld [vmem:[#allocation5 + $0x3f0] sm:$0xff]  }
  0x9b   :  { %3492 = vst [vmem:[#allocation63_spill] sm:$0xff] %v3231_v51  ;;  %v3235_v44 = vld [vmem:[#allocation5 + $0x330] sm:$0xff]  }
  0x9c   :  { %3493 = vst [vmem:[#allocation64_spill] sm:$0xff] %v3235_v44 }
  0x9d   :  { %2322 = vmatpush3.bf16.msra.mxu0 %v3211_v43  ;;  %2344 = vmatpush3.bf16.msra.mxu1 %v3213_v28  ;;  %v3237_v43 = vld [vmem:[#allocation5 + $0x3b0] sm:$0xff]   ;;  %v3241_v28 = vld [vmem:[#allocation5 + $0x378] sm:$0xff]  }
  0x9e   :  { %2323 = vmatprep.subr.bf16.mxu0 %v3217_v46  ;;  %2345 = vmatprep.subr.bf16.mxu1 %v3219_v26  ;;  %3494 = vst [vmem:[#allocation65_spill] sm:$0xff] %v3237_v43  ;;  %3495 = vst [vmem:[#allocation66_spill] sm:$0xff] %v3241_v28  ;;  %v3243_v46 = vld [vmem:[#allocation5 + $0x3f8] sm:$0xff]   ;;  %v582_v26 = vrot.slane %v3035_v25, %v2840_v34  ;;  %v2667_v34 = vld [vmem:[#allocation5 + $0x40] sm:$0xff]  }
  0xa1   :  { %2324 = vmatpush3.bf16.msra.mxu0 %v3223_v30  ;;  %2346 = vmatpush3.bf16.msra.mxu1 %v3225_v32  ;;  %v590_v30 = vrot.slane %v3035_v25, %v2846_v38  ;;  %v3251_v32 = vld [vmem:[#allocation5 + $0x338] sm:$0xff]   ;;  %v2668_v38 = vld [vmem:[#allocation5 + $0xc0] sm:$0xff]  }
  0xa2   :  { %2325 = vmatprep.subr.bf16.mxu0 %v3229_v36  ;;  %2347 = vmatprep.subr.bf16.mxu1 %v3231_v51  ;;  %v623_v51 = vpack.c.bf16 %v582_v26, %v582_v26  ;;  %v2669_v25 = vld [vmem:[#allocation5] sm:$0xff]   ;;  %v2673_v26 = vld [vmem:[#allocation5 + $0x8] sm:$0xff]  }
  0xa3   :  { %v625_v36 = vpack.c.bf16 %v590_v30, %v590_v30  ;;  %v2674_v30 = vld [vmem:[#allocation5 + $0x88] sm:$0xff]  }
  0xa5   :  { %2326 = vmatpush3.bf16.msra.mxu0 %v3235_v44  ;;  %2348 = vmatpush3.bf16.msra.mxu1 %v3237_v43  ;;  %v2670_v43 = vld [vmem:[#allocation5 + $0x80] sm:$0xff]   ;;  %v2671_v44 = vld [vmem:[#allocation5 + $0x48] sm:$0xff]  }
  0xa6   :  { %2327 = vmatprep.subr.bf16.mxu0 %v3241_v28  ;;  %2349 = vmatprep.subr.bf16.mxu1 %v3243_v46  ;;  %v2672_v28 = vld [vmem:[#allocation5 + $0xc8] sm:$0xff]  }
  0xa9   :  { %2328 = vmatpush3.bf16.msra.mxu0 %v3251_v32  ;;  %2350 = vmatpush3.bf16.msra.mxu1 %v3253_v40 }
  0xaa   :  { %2357 = vmatprep.subr.bf16.mxu0 %v2667_v34  ;;  %2379 = vmatprep.subr.bf16.mxu1 %v2668_v38  ;;  %v2675_v34 = vld [vmem:[#allocation5 + $0x50] sm:$0xff]  }
  0xab   :  { %v2678_v38 = vld [vmem:[#allocation5 + $0x90] sm:$0xff]  }
  0xac   :  { %1668 = vmatmul.mubr.bf16.vlgmr.msra.gmra.mrb[12].mxu0 %v623_v51  ;;  %1708 = vmatmul.mubr.bf16.vlgmr.msra.gmra.mrb[12].mxu1 %v625_v36  ;;  %v2676_v51 = vld [vmem:[#allocation5 + $0xd0] sm:$0xff]  }
  0xad   :  { %2358 = vmatpush3.bf16.msra.mxu0 %v2669_v25  ;;  %2380 = vmatpush3.bf16.msra.mxu1 %v2670_v43  ;;  %v2677_v36 = vld [vmem:[#allocation5 + $0x10] sm:$0xff]   ;;  %v2679_v43 = vld [vmem:[#allocation5 + $0x58] sm:$0xff]   ;;  %v2684_v25 = vld [vmem:[#allocation5 + $0xe0] sm:$0xff]  }
  0xae   :  { %2359 = vmatprep.subr.bf16.mxu0 %v2671_v44  ;;  %2381 = vmatprep.subr.bf16.mxu1 %v2672_v28  ;;  %v2680_v44 = vld [vmem:[#allocation5 + $0xd8] sm:$0xff]  }
  0xaf   :  { %1747 = vmatprep.mubr.bf16.mxu0 %v2861_v56  ;;  %1787 = vmatprep.mubr.bf16.mxu1 %v2865_v58  ;;  %v2681_v28 = vld [vmem:[#allocation5 + $0x18] sm:$0xff]   ;;  %v2683_v58 = vld [vmem:[#allocation5 + $0x60] sm:$0xff]  }
  0xb0   :  { %v2682_v56 = vld [vmem:[#allocation5 + $0x98] sm:$0xff]  }
  0xb1   :  { %2360 = vmatpush3.bf16.msra.mxu0 %v2673_v26  ;;  %2382 = vmatpush3.bf16.msra.mxu1 %v2674_v30  ;;  %v2685_v26 = vld [vmem:[#allocation5 + $0x20] sm:$0xff]  }
  0xb2   :  { %2361 = vmatprep.subr.bf16.mxu0 %v2675_v34  ;;  %2383 = vmatprep.subr.bf16.mxu1 %v2676_v51  ;;  %v2686_v30 = vld [vmem:[#allocation5 + $0xa0] sm:$0xff]   ;;  %v2687_v34 = vld [vmem:[#allocation5 + $0x68] sm:$0xff]  }
  0xb3   :  { %v2688_v51 = vld [vmem:[#allocation5 + $0xe8] sm:$0xff]  }
  0xb5   :  { %2362 = vmatpush3.bf16.msra.mxu0 %v2677_v36  ;;  %2384 = vmatpush3.bf16.msra.mxu1 %v2678_v38  ;;  %v2689_v36 = vld [vmem:[#allocation5 + $0x28] sm:$0xff]  }
  0xb6   :  { %2363 = vmatprep.subr.bf16.mxu0 %v2679_v43  ;;  %2385 = vmatprep.subr.bf16.mxu1 %v2680_v44  ;;  %v2690_v38 = vld [vmem:[#allocation5 + $0xa8] sm:$0xff]   ;;  %v2691_v43 = vld [vmem:[#allocation5 + $0x70] sm:$0xff]  }
  0xb7   :  { %v2692_v44 = vld [vmem:[#allocation5 + $0xf0] sm:$0xff]  }
  0xb9   :  { %2364 = vmatpush3.bf16.msra.mxu0 %v2681_v28  ;;  %2386 = vmatpush3.bf16.msra.mxu1 %v2682_v56  ;;  %v2693_v28 = vld [vmem:[#allocation5 + $0x30] sm:$0xff]  }
  0xba   :  { %2365 = vmatprep.subr.bf16.mxu0 %v2683_v58  ;;  %2387 = vmatprep.subr.bf16.mxu1 %v2684_v25  ;;  %v2694_v56 = vld [vmem:[#allocation5 + $0xb0] sm:$0xff]   ;;  %v2695_v58 = vld [vmem:[#allocation5 + $0x78] sm:$0xff]  }
  0xbb   :  { %v2696_v25 = vld [vmem:[#allocation5 + $0xf8] sm:$0xff]  }
  0xbd   :  { %2366 = vmatpush3.bf16.msra.mxu0 %v2685_v26  ;;  %2388 = vmatpush3.bf16.msra.mxu1 %v2686_v30  ;;  %v2697_v26 = vld [vmem:[#allocation5 + $0x38] sm:$0xff]  }
  0xbe   :  { %2367 = vmatprep.subr.bf16.mxu0 %v2687_v34  ;;  %2389 = vmatprep.subr.bf16.mxu1 %v2688_v51  ;;  %v2698_v30 = vld [vmem:[#allocation5 + $0xb8] sm:$0xff]   ;;  %v2699_v34 = vld [vmem:[#allocation5 + $0x140] sm:$0xff]  }
  0xbf   :  { %v2700_v51 = vld [vmem:[#allocation5 + $0x1c0] sm:$0xff]  }
  0xc1   :  { %2368 = vmatpush3.bf16.msra.mxu0 %v2689_v36  ;;  %2390 = vmatpush3.bf16.msra.mxu1 %v2690_v38 }
  0xc2   :  { %2369 = vmatprep.subr.bf16.mxu0 %v2691_v43  ;;  %2391 = vmatprep.subr.bf16.mxu1 %v2692_v44 }
  0xc5   :  { %2370 = vmatpush3.bf16.msra.mxu0 %v2693_v28  ;;  %2392 = vmatpush3.bf16.msra.mxu1 %v2694_v56 }
  0xc6   :  { %2371 = vmatprep.subr.bf16.mxu0 %v2695_v58  ;;  %2393 = vmatprep.subr.bf16.mxu1 %v2696_v25  ;;  %v3543_v58 = vld [vmem:[#allocation60_spill] sm:$0xff]  ;;  %v3544_v25 = vld [vmem:[#allocation61_spill] sm:$0xff] }
  0xc9   :  { %2372 = vmatpush3.bf16.msra.mxu0 %v2697_v26  ;;  %2394 = vmatpush3.bf16.msra.mxu1 %v2698_v30 }
  0xca   :  { %2401 = vmatprep.subr.bf16.mxu0 %v2699_v34  ;;  %2423 = vmatprep.subr.bf16.mxu1 %v2700_v51  ;;  %v3545_v34 = vld [vmem:[#allocation62_spill] sm:$0xff]  ;;  %v3546_v51 = vld [vmem:[#allocation63_spill] sm:$0xff] }
  0xcc   :  { %1748 = vmatmul.mubr.bf16.vlgmr.msra.gmra.mrb[16].mxu0 %v2859_v55  ;;  %1788 = vmatmul.mubr.bf16.vlgmr.msra.gmra.mrb[16].mxu1 %v2863_v57  ;;  %v3496_v55 = vld [vmem:[#allocation12_spill] sm:$0xff]  ;;  %v3497_v57 = vld [vmem:[#allocation14_spill] sm:$0xff] }
  0xcd   :  { %2402 = vmatpush3.bf16.msra.mxu0 %v2936_v52  ;;  %2424 = vmatpush3.bf16.msra.mxu1 %v2940_v63  ;;  %v3500_v52 = vld [vmem:[#allocation21_spill] sm:$0xff]  ;;  %v3503_v63 = vld [vmem:[#allocation24_spill] sm:$0xff] }
  0xce   :  { %2403 = vmatprep.subr.bf16.mxu0 %v2946_v6  ;;  %2425 = vmatprep.subr.bf16.mxu1 %v2952_v12  ;;  %v3507_v6 = vld [vmem:[#allocation28_spill] sm:$0xff]  ;;  %v3508_v12 = vld [vmem:[#allocation29_spill] sm:$0xff] }
  0xcf   :  { %1827 = vmatprep.mubr.bf16.mxu0 %v2869_v60  ;;  %1867 = vmatprep.mubr.bf16.mxu1 %v2873_v62  ;;  %v3498_v60 = vld [vmem:[#allocation19_spill] sm:$0xff]  ;;  %v3499_v62 = vld [vmem:[#allocation20_spill] sm:$0xff] }
  0xd1   :  { %2404 = vmatpush3.bf16.msra.mxu0 %v2956_v16  ;;  %2426 = vmatpush3.bf16.msra.mxu1 %v2958_v19  ;;  %v3509_v16 = vld [vmem:[#allocation30_spill] sm:$0xff]  ;;  %v3510_v19 = vld [vmem:[#allocation31_spill] sm:$0xff] }
  0xd2   :  { %2405 = vmatprep.subr.bf16.mxu0 %v2962_v20  ;;  %2427 = vmatprep.subr.bf16.mxu1 %v2966_v22  ;;  %v3511_v20 = vld [vmem:[#allocation32_spill] sm:$0xff]  ;;  %v3512_v22 = vld [vmem:[#allocation33_spill] sm:$0xff] }
  0xd5   :  { %2406 = vmatpush3.bf16.msra.mxu0 %v2968_v27  ;;  %2428 = vmatpush3.bf16.msra.mxu1 %v2970_v29  ;;  %v3513_v27 = vld [vmem:[#allocation34_spill] sm:$0xff]  ;;  %v3514_v29 = vld [vmem:[#allocation35_spill] sm:$0xff] }
  0xd6   :  { %2407 = vmatprep.subr.bf16.mxu0 %v2974_v31  ;;  %2429 = vmatprep.subr.bf16.mxu1 %v2978_v33  ;;  %v3515_v31 = vld [vmem:[#allocation36_spill] sm:$0xff]  ;;  %v3516_v33 = vld [vmem:[#allocation37_spill] sm:$0xff] }
  0xd9   :  { %2408 = vmatpush3.bf16.msra.mxu0 %v2984_v42  ;;  %2430 = vmatpush3.bf16.msra.mxu1 %v2986_v53  ;;  %v3517_v42 = vld [vmem:[#allocation38_spill] sm:$0xff]  ;;  %v3518_v53 = vld [vmem:[#allocation39_spill] sm:$0xff] }
  0xda   :  { %2409 = vmatprep.subr.bf16.mxu0 %v2990_v54  ;;  %2431 = vmatprep.subr.bf16.mxu1 %v2994_v0  ;;  %v3519_v54 = vld [vmem:[#allocation40_spill] sm:$0xff]  ;;  %v3520_v0 = vld [vmem:[#allocation41_spill] sm:$0xff] }
  0xdd   :  { %2410 = vmatpush3.bf16.msra.mxu0 %v2996_v3  ;;  %2432 = vmatpush3.bf16.msra.mxu1 %v2998_v4  ;;  %v3521_v3 = vld [vmem:[#allocation42_spill] sm:$0xff]  ;;  %v3522_v4 = vld [vmem:[#allocation43_spill] sm:$0xff] }
  0xde   :  { %2411 = vmatprep.subr.bf16.mxu0 %v3002_v5  ;;  %2433 = vmatprep.subr.bf16.mxu1 %v3006_v7  ;;  %v3523_v5 = vld [vmem:[#allocation11_spill] sm:$0xff]  ;;  %v3524_v7 = vld [vmem:[#allocation13_spill] sm:$0xff] }
  0xe1   :  { %2412 = vmatpush3.bf16.msra.mxu0 %v3010_v11  ;;  %2434 = vmatpush3.bf16.msra.mxu1 %v3012_v14  ;;  %v3525_v11 = vld [vmem:[#allocation16_spill] sm:$0xff]  ;;  %v3526_v14 = vld [vmem:[#allocation18_spill] sm:$0xff] }
  0xe2   :  { %2413 = vmatprep.subr.bf16.mxu0 %v3016_v15  ;;  %2435 = vmatprep.subr.bf16.mxu1 %v3020_v17  ;;  %v3527_v15 = vld [vmem:[#allocation44_spill] sm:$0xff]  ;;  %v3528_v17 = vld [vmem:[#allocation45_spill] sm:$0xff] }
  0xe5   :  { %2414 = vmatpush3.bf16.msra.mxu0 %v3022_v21  ;;  %2436 = vmatpush3.bf16.msra.mxu1 %v3024_v8  ;;  %v3529_v21 = vld [vmem:[#allocation46_spill] sm:$0xff]  ;;  %v3530_v8 = vld [vmem:[#allocation47_spill] sm:$0xff] }
  0xe6   :  { %2415 = vmatprep.subr.bf16.mxu0 %v3028_v23  ;;  %2437 = vmatprep.subr.bf16.mxu1 %v3032_v24  ;;  %v3531_v23 = vld [vmem:[#allocation48_spill] sm:$0xff]  ;;  %v3534_v24 = vld [vmem:[#allocation51_spill] sm:$0xff] }
  0xe9   :  { %2416 = vmatpush3.bf16.msra.mxu0 %v3037_v35  ;;  %2438 = vmatpush3.bf16.msra.mxu1 %v3039_v49  ;;  %v3536_v35 = vld [vmem:[#allocation53_spill] sm:$0xff]  ;;  %v3537_v49 = vld [vmem:[#allocation54_spill] sm:$0xff] }
  0xea   :  { %2445 = vmatprep.subr.bf16.mxu0 %v3047_v1  ;;  %2467 = vmatprep.subr.bf16.mxu1 %v3051_v13  ;;  %v3538_v1 = vld [vmem:[#allocation55_spill] sm:$0xff]  ;;  %v3539_v13 = vld [vmem:[#allocation56_spill] sm:$0xff] }
  0xec   :  { %1828 = vmatmul.mubr.bf16.vlgmr.msra.gmra.mrb[20].mxu0 %v2867_v59  ;;  %1868 = vmatmul.mubr.bf16.vlgmr.msra.gmra.mrb[20].mxu1 %v2871_v61  ;;  %v3501_v59 = vld [vmem:[#allocation22_spill] sm:$0xff]  ;;  %v3502_v61 = vld [vmem:[#allocation23_spill] sm:$0xff] }
  0xed   :  { %2446 = vmatpush3.bf16.msra.mxu0 %v3053_v2  ;;  %2468 = vmatpush3.bf16.msra.mxu1 %v3059_v47  ;;  %v3504_v47 = vld [vmem:[#allocation25_spill] sm:$0xff] }
  0xee   :  { %2447 = vmatprep.subr.bf16.mxu0 %v3063_v45  ;;  %2469 = vmatprep.subr.bf16.mxu1 %v3067_v48  ;;  %v3505_v45 = vld [vmem:[#allocation26_spill] sm:$0xff]  ;;  %v3506_v48 = vld [vmem:[#allocation27_spill] sm:$0xff]  ;;  %v3540_v2 = vld [vmem:[#allocation57_spill] sm:$0xff] }
  0xef   :  { %1907 = vmatprep.mubr.bf16.mxu0 %v3496_v55  ;;  %1947 = vmatprep.mubr.bf16.mxu1 %v3497_v57  ;;  %v3547_v57 = vld [vmem:[#allocation64_spill] sm:$0xff] }
  0xf1   :  { %2448 = vmatpush3.bf16.msra.mxu0 %v3498_v60  ;;  %2470 = vmatpush3.bf16.msra.mxu1 %v3499_v62  ;;  %v3548_v60 = vld [vmem:[#allocation65_spill] sm:$0xff]  ;;  %v3549_v62 = vld [vmem:[#allocation66_spill] sm:$0xff] }
  0xf2   :  { %2449 = vmatprep.subr.bf16.mxu0 %v3500_v52  ;;  %2471 = vmatprep.subr.bf16.mxu1 %v3501_v59  ;;  %v3550_v52 = vld [vmem:[#allocation15_spill] sm:$0xff]  ;;  %v3551_v59 = vld [vmem:[#allocation17_spill] sm:$0xff] }
  0xf5   :  { %2450 = vmatpush3.bf16.msra.mxu0 %v3502_v61  ;;  %2472 = vmatpush3.bf16.msra.mxu1 %v3503_v63 }
  0xf6   :  { %2451 = vmatprep.subr.bf16.mxu0 %v3504_v47  ;;  %2473 = vmatprep.subr.bf16.mxu1 %v3505_v45 }
  0xf9   :  { %2452 = vmatpush3.bf16.msra.mxu0 %v3506_v48  ;;  %2474 = vmatpush3.bf16.msra.mxu1 %v3507_v6 }
  0xfa   :  { %2453 = vmatprep.subr.bf16.mxu0 %v3508_v12  ;;  %2475 = vmatprep.subr.bf16.mxu1 %v3509_v16 }
  0xfd   :  { %2454 = vmatpush3.bf16.msra.mxu0 %v3510_v19  ;;  %2476 = vmatpush3.bf16.msra.mxu1 %v3511_v20 }
  0xfe   :  { %2455 = vmatprep.subr.bf16.mxu0 %v3512_v22  ;;  %2477 = vmatprep.subr.bf16.mxu1 %v3513_v27 }
 0x101   :  { %2456 = vmatpush3.bf16.msra.mxu0 %v3514_v29  ;;  %2478 = vmatpush3.bf16.msra.mxu1 %v3515_v31 }
 0x102   :  { %2457 = vmatprep.subr.bf16.mxu0 %v3516_v33  ;;  %2479 = vmatprep.subr.bf16.mxu1 %v3517_v42 }
 0x105   :  { %2458 = vmatpush3.bf16.msra.mxu0 %v3518_v53  ;;  %2480 = vmatpush3.bf16.msra.mxu1 %v3519_v54 }
 0x106   :  { %2459 = vmatprep.subr.bf16.mxu0 %v3520_v0  ;;  %2481 = vmatprep.subr.bf16.mxu1 %v3521_v3 }
 0x109   :  { %2460 = vmatpush3.bf16.msra.mxu0 %v3141_v50  ;;  %2482 = vmatpush3.bf16.msra.mxu1 %v3143_v9  ;;  %v3541_v50 = vld [vmem:[#allocation58_spill] sm:$0xff]  ;;  %v3542_v9 = vld [vmem:[#allocation59_spill] sm:$0xff] }
 0x10a   :  { %2489 = vmatprep.subr.bf16.mxu0 %v3151_v10  ;;  %2511 = vmatprep.subr.bf16.mxu1 %v3522_v4 }
 0x10c   :  { %1908 = vmatmul.mubr.bf16.vlgmr.msra.gmra.mrb[24].mxu0 %v3523_v5  ;;  %1948 = vmatmul.mubr.bf16.vlgmr.msra.gmra.mrb[24].mxu1 %v3524_v7 }
 0x10d   :  { %2490 = vmatpush3.bf16.msra.mxu0 %v3157_v37  ;;  %2512 = vmatpush3.bf16.msra.mxu1 %v3163_v39  ;;  %v3532_v37 = vld [vmem:[#allocation49_spill] sm:$0xff]  ;;  %v3533_v39 = vld [vmem:[#allocation50_spill] sm:$0xff] }
 0x10e   :  { %2491 = vmatprep.subr.bf16.mxu0 %v3167_v18  ;;  %2513 = vmatprep.subr.bf16.mxu1 %v3171_v41  ;;  %v3535_v41 = vld [vmem:[#allocation52_spill] sm:$0xff] }
 0x10f   :  { %1987 = vmatprep.mubr.bf16.mxu0 %v3525_v11  ;;  %2027 = vmatprep.mubr.bf16.mxu1 %v3526_v14 }
 0x111   :  { %2492 = vmatpush3.bf16.msra.mxu0 %v3527_v15  ;;  %2514 = vmatpush3.bf16.msra.mxu1 %v3528_v17 }
 0x112   :  { %2493 = vmatprep.subr.bf16.mxu0 %v3529_v21  ;;  %2515 = vmatprep.subr.bf16.mxu1 %v3530_v8 }
 0x115   :  { %2494 = vmatpush3.bf16.msra.mxu0 %v3531_v23  ;;  %2516 = vmatpush3.bf16.msra.mxu1 %v3532_v37 }
 0x116   :  { %2495 = vmatprep.subr.bf16.mxu0 %v3533_v39  ;;  %2517 = vmatprep.subr.bf16.mxu1 %v3534_v24 }
 0x119   :  { %2496 = vmatpush3.bf16.msra.mxu0 %v3535_v41  ;;  %2518 = vmatpush3.bf16.msra.mxu1 %v3536_v35 }
 0x11a   :  { %2497 = vmatprep.subr.bf16.mxu0 %v3537_v49  ;;  %2519 = vmatprep.subr.bf16.mxu1 %v3538_v1 }
 0x11d   :  { %2498 = vmatpush3.bf16.msra.mxu0 %v3539_v13  ;;  %2520 = vmatpush3.bf16.msra.mxu1 %v3540_v2 }
 0x11e   :  { %2499 = vmatprep.subr.bf16.mxu0 %v3541_v50  ;;  %2521 = vmatprep.subr.bf16.mxu1 %v3542_v9 }
 0x11f   :  { %v2197_v10 = vpop.f32.mrb[0].mxu0  ;;  %v2219_v18 = vpop.f32.mrb[0].mxu1 }
 0x120   :  { %v2198_v36 = vpop.f32.mrb[1].mxu0  ;;  %v2220_v38 = vpop.f32.mrb[1].mxu1 }
 0x121   :  { %v2199_v43 = vadd.f32 %v2198_v36, %v2197_v10  ;;  %v2221_v44 = vadd.f32 %v2220_v38, %v2219_v18  ;;  %v2200_v28 = vpop.f32.mrb[2].mxu0  ;;  %v2222_v56 = vpop.f32.mrb[2].mxu1  ;;  %2500 = vmatpush3.bf16.msra.mxu0 %v3543_v58  ;;  %2522 = vmatpush3.bf16.msra.mxu1 %v3544_v25 }
 0x122   :  { %v2201_v26 = vpop.f32.mrb[3].mxu0  ;;  %v2223_v30 = vpop.f32.mrb[3].mxu1  ;;  %2501 = vmatprep.subr.bf16.mxu0 %v3545_v34  ;;  %2523 = vmatprep.subr.bf16.mxu1 %v3546_v51 }
 0x123   :  { %v1470_v55 = vadd.f32 %v2221_v44, %v2199_v43 }
 0x125   :  { %2502 = vmatpush3.bf16.msra.mxu0 %v3547_v57  ;;  %2524 = vmatpush3.bf16.msra.mxu1 %v3548_v60 }
 0x126   :  { %2503 = vmatprep.subr.bf16.mxu0 %v3549_v62  ;;  %2525 = vmatprep.subr.bf16.mxu1 %v3243_v46 }
 0x129   :  { %2504 = vmatpush3.bf16.msra.mxu0 %v3251_v32  ;;  %2526 = vmatpush3.bf16.msra.mxu1 %v3253_v40 }
 0x12c   :  { %1988 = vmatmul.mubr.bf16.vlgmr.msra.gmra.mrb[28].mxu0 %v3550_v52  ;;  %2028 = vmatmul.mubr.bf16.vlgmr.msra.gmra.mrb[28].mxu1 %v3551_v59 }
 0x13f   :  { %v2241_v61 = vpop.f32.mrb[4].mxu0  ;;  %v2263_v63 = vpop.f32.mrb[4].mxu1 }
 0x140   :  { %v2242_v47 = vpop.f32.mrb[5].mxu0  ;;  %v2264_v45 = vpop.f32.mrb[5].mxu1 }
 0x141   :  { %v2243_v48 = vadd.f32 %v2242_v47, %v2241_v61  ;;  %v2265_v6 = vadd.f32 %v2264_v45, %v2263_v63  ;;  %v2244_v12 = vpop.f32.mrb[6].mxu0  ;;  %v2266_v16 = vpop.f32.mrb[6].mxu1 }
 0x142   :  { %v2245_v19 = vpop.f32.mrb[7].mxu0  ;;  %v2267_v20 = vpop.f32.mrb[7].mxu1 }
 0x143   :  { %v1510_v22 = vadd.f32 %v2243_v48, %v1470_v55 }
 0x145   :  { %v1550_v46 = vadd.f32 %v2265_v6, %v1510_v22 }
 0x15f   :  { %v2285_v27 = vpop.f32.mrb[8].mxu0  ;;  %v2307_v32 = vpop.f32.mrb[8].mxu1 }
 0x160   :  { %v2286_v29 = vpop.f32.mrb[9].mxu0  ;;  %v2308_v40 = vpop.f32.mrb[9].mxu1 }
 0x161   :  { %v2287_v31 = vadd.f32 %v2286_v29, %v2285_v27  ;;  %v2309_v33 = vadd.f32 %v2308_v40, %v2307_v32  ;;  %v2288_v42 = vpop.f32.mrb[10].mxu0  ;;  %v2310_v53 = vpop.f32.mrb[10].mxu1 }
 0x162   :  { %v2289_v54 = vpop.f32.mrb[11].mxu0  ;;  %v2311_v0 = vpop.f32.mrb[11].mxu1 }
 0x163   :  { %v1590_v3 = vadd.f32 %v2287_v31, %v1550_v46 }
 0x165   :  { %v1630_v4 = vadd.f32 %v2309_v33, %v1590_v3 }
 0x17f   :  { %v2329_v5 = vpop.f32.mrb[12].mxu0  ;;  %v2351_v7 = vpop.f32.mrb[12].mxu1 }
 0x180   :  { %v2330_v11 = vpop.f32.mrb[13].mxu0  ;;  %v2352_v14 = vpop.f32.mrb[13].mxu1 }
 0x181   :  { %v2331_v15 = vadd.f32 %v2330_v11, %v2329_v5  ;;  %v2353_v17 = vadd.f32 %v2352_v14, %v2351_v7  ;;  %v2332_v21 = vpop.f32.mrb[14].mxu0  ;;  %v2354_v8 = vpop.f32.mrb[14].mxu1 }
 0x182   :  { %v2333_v23 = vpop.f32.mrb[15].mxu0  ;;  %v2355_v37 = vpop.f32.mrb[15].mxu1 }
 0x183   :  { %v1670_v39 = vadd.f32 %v2331_v15, %v1630_v4 }
 0x185   :  { %v1710_v24 = vadd.f32 %v2353_v17, %v1670_v39 }
 0x19f   :  { %v2373_v41 = vpop.f32.mrb[16].mxu0  ;;  %v2395_v35 = vpop.f32.mrb[16].mxu1 }
 0x1a0   :  { %v2374_v49 = vpop.f32.mrb[17].mxu0  ;;  %v2396_v1 = vpop.f32.mrb[17].mxu1 }
 0x1a1   :  { %v2375_v13 = vadd.f32 %v2374_v49, %v2373_v41  ;;  %v2397_v2 = vadd.f32 %v2396_v1, %v2395_v35  ;;  %v2376_v50 = vpop.f32.mrb[18].mxu0  ;;  %v2398_v9 = vpop.f32.mrb[18].mxu1 }
 0x1a2   :  { %v2377_v10 = vpop.f32.mrb[19].mxu0  ;;  %v2399_v18 = vpop.f32.mrb[19].mxu1 }
 0x1a3   :  { %v1750_v36 = vadd.f32 %v2375_v13, %v1710_v24 }
 0x1a5   :  { %v1790_v38 = vadd.f32 %v2397_v2, %v1750_v36 }
 0x1bf   :  { %v2417_v43 = vpop.f32.mrb[20].mxu0  ;;  %v2439_v44 = vpop.f32.mrb[20].mxu1 }
 0x1c0   :  { %v2418_v28 = vpop.f32.mrb[21].mxu0  ;;  %v2440_v56 = vpop.f32.mrb[21].mxu1 }
 0x1c1   :  { %v2419_v58 = vadd.f32 %v2418_v28, %v2417_v43  ;;  %v2441_v25 = vadd.f32 %v2440_v56, %v2439_v44  ;;  %v2420_v26 = vpop.f32.mrb[22].mxu0  ;;  %v2442_v30 = vpop.f32.mrb[22].mxu1 }
 0x1c2   :  { %v2421_v34 = vpop.f32.mrb[23].mxu0  ;;  %v2443_v51 = vpop.f32.mrb[23].mxu1 }
 0x1c3   :  { %v1830_v55 = vadd.f32 %v2419_v58, %v1790_v38 }
 0x1c5   :  { %v1870_v57 = vadd.f32 %v2441_v25, %v1830_v55 }
 0x1df   :  { %v2461_v60 = vpop.f32.mrb[24].mxu0  ;;  %v2483_v62 = vpop.f32.mrb[24].mxu1 }
 0x1e0   :  { %v2462_v52 = vpop.f32.mrb[25].mxu0  ;;  %v2484_v59 = vpop.f32.mrb[25].mxu1 }
 0x1e1   :  { %v2463_v61 = vadd.f32 %v2462_v52, %v2461_v60  ;;  %v2485_v63 = vadd.f32 %v2484_v59, %v2483_v62  ;;  %v2464_v47 = vpop.f32.mrb[26].mxu0  ;;  %v2486_v45 = vpop.f32.mrb[26].mxu1 }
 0x1e2   :  { %v2465_v48 = vpop.f32.mrb[27].mxu0  ;;  %v2487_v6 = vpop.f32.mrb[27].mxu1 }
 0x1e3   :  { %v1910_v12 = vadd.f32 %v2463_v61, %v1870_v57 }
 0x1e5   :  { %v1950_v16 = vadd.f32 %v2485_v63, %v1910_v12 }
 0x1ff   :  { %v2505_v19 = vpop.f32.mrb[28].mxu0  ;;  %v2527_v20 = vpop.f32.mrb[28].mxu1 }
 0x200   :  { %v2506_v22 = vpop.f32.mrb[29].mxu0  ;;  %v2528_v46 = vpop.f32.mrb[29].mxu1 }
 0x201   :  { %v2507_v27 = vadd.f32 %v2506_v22, %v2505_v19  ;;  %v2529_v32 = vadd.f32 %v2528_v46, %v2527_v20  ;;  %v2508_v29 = vpop.f32.mrb[30].mxu0  ;;  %v2530_v40 = vpop.f32.mrb[30].mxu1 }
 0x202   :  { %v2509_v31 = vpop.f32.mrb[31].mxu0  ;;  %v2531_v33 = vpop.f32.mrb[31].mxu1 }
 0x203   :  { %v1990_v42 = vadd.f32 %v2507_v27, %v1950_v16 }
 0x205   :  { %v2030_v53 = vadd.f32 %v2529_v32, %v1990_v42 }
 0x207   :  { %v2035_v54 = vmul.f32 0.25, %v2030_v53 }
 0x209   :  { %2036 = vst [vmem:[#allocation7] sm:$0x1] %v2035_v54 }
 0x20a   :  { %2756 = shalt.err (!%p2753_p6)
}
 0x20b   :  { %s2757_s11 = scalar_lea.hbm %s3383_s2, 16 }
 0x20c   :  { %p2758_p7 = scmp.ne.s32.totalorder %s3383_s2, %s2757_s11  ;;  %p2761_p8 = scmp.lt.u32.totalorder %s2757_s11, %s3383_s2 }
 0x20e   :  { %p2763_p9 = pnand %p2761_p8, %p2758_p7 }
 0x210   :  { %2766 = shalt.err (!%p2763_p9)
}
 0x211   :  { %2046 = dma.vmem_to_hbm [thread:$0]  %s2044_s6, 16, %s3383_s2, [#allocation4]  }
 0x212   :  { %2771 = dma.done.wait [#allocation4], 16  }
 0x213   :  { %2772 = vsyncadd [#allocation4], 4294967280 }
 0x214   :  { %2050 = vsyncpa [#allocation3], 1 }
 0x215   :  { %2051 = vsyncpa [#allocation6], 1 }
 0x216   :  { %2052 = vsyncpa [#allocation4], 1 }

</bundles_post_ra>
